<compile_context>
chip_gen: v7x
topology: tpu7x:2x2x1
jax: 0.10.0
libtpu: 0.0.40
codegen_flags: <defaults>
</compile_context>

<pallas_src>
import jax
import jax.numpy as jnp
from jax.experimental import pallas as pl
from jax.experimental.pallas import tpu as pltpu

ENC_DIM = 40      # stand-in encoder output width (matches fc1 in_features)
N_CLASSES = 15    # fc1 out_features
LANE = 128        # fc1 outputs padded to a full lane width -> unmasked stores
TILE_B = 8        # batch tile (sublane-aligned)
TILE_F = 512      # encoder-feature reduction tile (multiple of 128)


def vae_genre_kernel(x_ref, wenc_ref, benc_ref, wfc_ref, bfc_ref,
                     out_ref, acc_ref):
    # x_ref:    (tB, tF)      f32   flattened input tile (cast to bf16 here)
    # wenc_ref: (tF, 40)      bf16  stand-in encoder weight tile
    # benc_ref: (1, 40)       f32
    # wfc_ref:  (40, 128)     bf16  fc1 weight, zero-padded 15 -> 128 lanes
    # bfc_ref:  (1, 128)      f32   fc1 bias,   zero-padded 15 -> 128 lanes
    # out_ref:  (2, tB, 128)  f32   [0]=fc1(out), [1]=fc1(relu_out)
    # acc_ref:  (tB, 40)      f32   encoder accumulator (persists across k)
    k = pl.program_id(1)

    @pl.when(k == 0)
    def _():
        acc_ref[...] = jnp.zeros_like(acc_ref)

    # Encoder partial product: bf16 MXU matmul over this F-tile, f32 accum.
    acc_ref[...] += jnp.dot(x_ref[...].astype(jnp.bfloat16), wenc_ref[...],
                            preferred_element_type=jnp.float32)

    @pl.when(k == pl.num_programs(1) - 1)
    def _():
        h = acc_ref[...] + benc_ref[...]          # (tB, 40) f32 elementwise
        relu_h = jnp.maximum(h, 0.0)              # f32 relu (v5e-safe)
        wfc = wfc_ref[...]                        # (40, 128) bf16
        bfc = bfc_ref[...]                        # (1, 128)  f32
        # Two dots against the shared fc1 weight — no concatenate / VMEM copy.
        out_ref[0] = jnp.dot(h.astype(jnp.bfloat16), wfc,
                             preferred_element_type=jnp.float32) + bfc
        out_ref[1] = jnp.dot(relu_h.astype(jnp.bfloat16), wfc,
                             preferred_element_type=jnp.float32) + bfc


def prepare_params(w_enc, b_enc, w_fc, b_fc):
    """One-time (init/load-time) weight preprocessing, hoisted out of the
    per-call path: bf16 casts, F padding for the reduction grid, and 15->128
    lane zero-padding of fc1 so the kernel's output stores are unmasked."""
    in_feats = w_enc.shape[0]
    f_pad = pl.cdiv(in_feats, TILE_F) * TILE_F
    w_enc_p = jnp.zeros((f_pad, ENC_DIM), jnp.bfloat16).at[:in_feats, :].set(
        w_enc.astype(jnp.bfloat16))
    b_enc_p = b_enc.reshape(1, ENC_DIM).astype(jnp.float32)

    n_out = w_fc.shape[1]
    w_fc_p = jnp.zeros((ENC_DIM, LANE), jnp.bfloat16).at[:, :n_out].set(
        w_fc.astype(jnp.bfloat16))
    b_fc_p = jnp.zeros((1, LANE), jnp.float32).at[:, :n_out].set(
        b_fc.reshape(1, n_out).astype(jnp.float32))
    return (w_enc_p, b_enc_p, w_fc_p, b_fc_p, n_out)


def vae_genre_forward(x_nchw, prepared):
    w_enc_p, b_enc_p, w_fc_p, b_fc_p, n_out = prepared
    B = x_nchw.shape[0]
    feats = x_nchw.reshape(B, -1)                 # view; stays f32 (cast in-kernel)
    F = feats.shape[1]
    F_pad = w_enc_p.shape[0]
    B_pad = pl.cdiv(B, TILE_B) * TILE_B
    if (B_pad != B) or (F_pad != F):
        feats = jnp.pad(feats, ((0, B_pad - B), (0, F_pad - F)))

    grid = (B_pad // TILE_B, F_pad // TILE_F)

    flops = 2 * B_pad * F_pad * ENC_DIM + 2 * (2 * B_pad) * ENC_DIM * LANE
    bytes_accessed = (B_pad * F_pad * 4 + w_enc_p.size * 2 + b_enc_p.size * 4
                      + w_fc_p.size * 2 + b_fc_p.size * 4
                      + 2 * B_pad * LANE * 4)

    slab = pl.pallas_call(
        vae_genre_kernel,
        out_shape=jax.ShapeDtypeStruct((2, B_pad, LANE), jnp.float32),
        grid_spec=pltpu.PrefetchScalarGridSpec(
            num_scalar_prefetch=0,
            grid=grid,
            in_specs=[
                pl.BlockSpec((TILE_B, TILE_F), lambda i, k: (i, k)),   # x
                pl.BlockSpec((TILE_F, ENC_DIM), lambda i, k: (k, 0)),  # w_enc
                pl.BlockSpec((1, ENC_DIM), lambda i, k: (0, 0)),       # b_enc
                pl.BlockSpec((ENC_DIM, LANE), lambda i, k: (0, 0)),    # w_fc
                pl.BlockSpec((1, LANE), lambda i, k: (0, 0)),          # b_fc
            ],
            out_specs=pl.BlockSpec((2, TILE_B, LANE), lambda i, k: (0, i, 0)),
            scratch_shapes=[pltpu.VMEM((TILE_B, ENC_DIM), jnp.float32)],
        ),
        compiler_params=pltpu.CompilerParams(
            dimension_semantics=("parallel", "arbitrary")),
        cost_estimate=pl.CostEstimate(flops=flops, transcendentals=0,
                                      bytes_accessed=bytes_accessed),
    )(feats, w_enc_p, b_enc_p, w_fc_p, b_fc_p)

    out = slab[0, :B, :n_out]
    relu_out = slab[1, :B, :n_out]
    return out, relu_out


def vae_genre_reference(x_nchw, w_enc, b_enc, w_fc, b_fc):
    """Pure-JAX reference applying the same bf16 matmul casts as the kernel."""
    B = x_nchw.shape[0]
    feats = x_nchw.reshape(B, -1)
    h = jnp.dot(feats.astype(jnp.bfloat16), w_enc.astype(jnp.bfloat16),
                preferred_element_type=jnp.float32) + b_enc.reshape(1, -1)
    relu_h = jnp.maximum(h, 0.0)
    out = jnp.dot(h.astype(jnp.bfloat16), w_fc.astype(jnp.bfloat16),
                  preferred_element_type=jnp.float32) + b_fc.reshape(1, -1)
    relu_out = jnp.dot(relu_h.astype(jnp.bfloat16), w_fc.astype(jnp.bfloat16),
                       preferred_element_type=jnp.float32) + b_fc.reshape(1, -1)
    return out, relu_out


def init_params(key, in_feats, enc_dim=ENC_DIM, n_classes=N_CLASSES):
    """Deterministic PyTorch-Linear-style init (uniform +-1/sqrt(fan_in))."""
    k1, k2, k3, k4 = jax.random.split(key, 4)
    lim_enc = 1.0 / jnp.sqrt(in_feats)
    lim_fc = 1.0 / jnp.sqrt(enc_dim)
    # weights stored as (in, out) = PyTorch (out, in) transposed
    w_enc = jax.random.uniform(k1, (in_feats, enc_dim), jnp.float32,
                               -lim_enc, lim_enc)
    b_enc = jax.random.uniform(k2, (1, enc_dim), jnp.float32,
                               -lim_enc, lim_enc)
    w_fc = jax.random.uniform(k3, (enc_dim, n_classes), jnp.float32,
                              -lim_fc, lim_fc)
    b_fc = jax.random.uniform(k4, (1, n_classes), jnp.float32,
                              -lim_fc, lim_fc)
    return w_enc, b_enc, w_fc, b_fc


if __name__ == "__main__":
    key = jax.random.PRNGKey(0)
    kx, kp = jax.random.split(key)

    B, C, H, W = 2, 4, 16, 16                       # small NCHW input
    x = jax.random.normal(kx, (B, C, H, W), jnp.float32)

    w_enc, b_enc, w_fc, b_fc = init_params(kp, C * H * W)
    prepared = prepare_params(w_enc, b_enc, w_fc, b_fc)   # one-time, init-time

    out, relu_out = vae_genre_forward(x, prepared)
    jax.block_until_ready((out, relu_out))

    assert out.shape == (B, N_CLASSES) and relu_out.shape == (B, N_CLASSES)
    assert out.dtype == jnp.float32 and relu_out.dtype == jnp.float32

    # Sanity-check against a pure-JAX reference using the same bf16 casts.
    ref_out, ref_relu_out = vae_genre_reference(x, w_enc, b_enc, w_fc, b_fc)
    assert jnp.allclose(out, ref_out, rtol=5e-2, atol=5e-2)
    assert jnp.allclose(relu_out, ref_relu_out, rtol=5e-2, atol=5e-2)

    print("KERNEL_OK")
</pallas_src>

<mosaic_0001>
module attributes {stable_mosaic.version = 11 : i64} {
  func.func @vae_genre_kernel(%arg0: i32, %arg1: i32, %arg2: memref<8x512xf32, #tpu.memory_space<vmem>>, %arg3: memref<512x40xbf16, #tpu.memory_space<vmem>>, %arg4: memref<1x40xf32, #tpu.memory_space<vmem>>, %arg5: memref<40x128xbf16, #tpu.memory_space<vmem>>, %arg6: memref<1x128xf32, #tpu.memory_space<vmem>>, %arg7: memref<2x8x128xf32, #tpu.memory_space<vmem>>, %arg8: memref<8x40xf32, #tpu.memory_space<vmem>>) attributes {dimension_semantics = [#tpu.dimension_semantics<parallel>, #tpu.dimension_semantics<arbitrary>], iteration_bounds = array<i64: 1, 2>, scalar_prefetch = 0 : i64, scratch_operands = 1 : i64, tpu.core_type = #tpu.core_type<tc>, window_params = [{transform_indices = @transform_0, window_bounds = array<i64: 8, 512>}, {transform_indices = @transform_1, window_bounds = array<i64: 512, 40>}, {pipeline_mode = #tpu.pipeline_mode<synchronous>, transform_indices = @transform_2, window_bounds = array<i64: 1, 40>}, {pipeline_mode = #tpu.pipeline_mode<synchronous>, transform_indices = @transform_3, window_bounds = array<i64: 40, 128>}, {pipeline_mode = #tpu.pipeline_mode<synchronous>, transform_indices = @transform_4, window_bounds = array<i64: 1, 128>}, {transform_indices = @transform_5, window_bounds = array<i64: 2, 8, 128>}]} {
    %c0_i32 = arith.constant 0 : i32
    %0 = arith.cmpi eq, %arg1, %c0_i32 : i32
    %1 = arith.extui %0 : i1 to i32
    %c0_i32_0 = arith.constant 0 : i32
    %2 = arith.cmpi ne, %1, %c0_i32_0 : i32
    scf.if %2 {
      %cst_9 = arith.constant 0.000000e+00 : f32
      %13 = vector.broadcast %cst_9 : f32 to vector<8x40xf32>
      %c0_10 = arith.constant 0 : index
      %c0_11 = arith.constant 0 : index
      %14 = vector.load %arg8[%c0_10, %c0_11] : memref<8x40xf32, #tpu.memory_space<vmem>>, vector<8x40xf32>
      tpu.vector_store %arg8[%c0_10, %c0_11], %13 {strides = array<i32>} : memref<8x40xf32, #tpu.memory_space<vmem>>, vector<8x40xf32>,
    } else {
    }
    %c0 = arith.constant 0 : index
    %c0_1 = arith.constant 0 : index
    %3 = vector.load %arg8[%c0, %c0_1] : memref<8x40xf32, #tpu.memory_space<vmem>>, vector<8x40xf32>
    %c0_2 = arith.constant 0 : index
    %c0_3 = arith.constant 0 : index
    %4 = vector.load %arg2[%c0_2, %c0_3] : memref<8x512xf32, #tpu.memory_space<vmem>>, vector<8x512xf32>
    %5 = arith.truncf %4 : vector<8x512xf32> to vector<8x512xbf16>
    %c0_4 = arith.constant 0 : index
    %c0_5 = arith.constant 0 : index
    %6 = vector.load %arg3[%c0_4, %c0_5] : memref<512x40xbf16, #tpu.memory_space<vmem>>, vector<512x40xbf16>
    %cst = arith.constant dense<0.000000e+00> : vector<8x40xf32>
    %7 = tpu.matmul %5, %6, %cst {dimension_numbers = #tpu.dot_dimension_numbers<[1], [0], [0], [1], [0, 0, 1, 1], [], []>} : vector<8x512xbf16>, vector<512x40xbf16>, vector<8x40xf32> -> vector<8x40xf32>
    %8 = arith.addf %3, %7 : vector<8x40xf32>
    %c0_6 = arith.constant 0 : index
    %c0_7 = arith.constant 0 : index
    %9 = vector.load %arg8[%c0_6, %c0_7] : memref<8x40xf32, #tpu.memory_space<vmem>>, vector<8x40xf32>
    tpu.vector_store %arg8[%c0_6, %c0_7], %8 {strides = array<i32>} : memref<8x40xf32, #tpu.memory_space<vmem>>, vector<8x40xf32>,
    %c1_i32 = arith.constant 1 : i32
    %10 = arith.cmpi eq, %arg1, %c1_i32 : i32
    %11 = arith.extui %10 : i1 to i32
    %c0_i32_8 = arith.constant 0 : i32
    %12 = arith.cmpi ne, %11, %c0_i32_8 : i32
    scf.if %12 {
      %c0_9 = arith.constant 0 : index
      %c0_10 = arith.constant 0 : index
      %13 = vector.load %arg8[%c0_9, %c0_10] : memref<8x40xf32, #tpu.memory_space<vmem>>, vector<8x40xf32>
      %c0_11 = arith.constant 0 : index
      %c0_12 = arith.constant 0 : index
      %14 = vector.load %arg4[%c0_11, %c0_12] : memref<1x40xf32, #tpu.memory_space<vmem>>, vector<1x40xf32>
      %15 = vector.broadcast %14 : vector<1x40xf32> to vector<8x40xf32>
      %16 = arith.addf %13, %15 : vector<8x40xf32>
      %cst_13 = arith.constant 0.000000e+00 : f32
      %17 = vector.broadcast %cst_13 : f32 to vector<8x40xf32>
      %18 = arith.maximumf %16, %17 : vector<8x40xf32>
      %c0_14 = arith.constant 0 : index
      %c0_15 = arith.constant 0 : index
      %19 = vector.load %arg5[%c0_14, %c0_15] : memref<40x128xbf16, #tpu.memory_space<vmem>>, vector<40x128xbf16>
      %c0_16 = arith.constant 0 : index
      %c0_17 = arith.constant 0 : index
      %20 = vector.load %arg6[%c0_16, %c0_17] : memref<1x128xf32, #tpu.memory_space<vmem>>, vector<1x128xf32>
      %21 = arith.truncf %16 : vector<8x40xf32> to vector<8x40xbf16>
      %cst_18 = arith.constant dense<0.000000e+00> : vector<8x128xf32>
      %22 = tpu.matmul %21, %19, %cst_18 {dimension_numbers = #tpu.dot_dimension_numbers<[1], [0], [0], [1], [0, 0, 1, 1], [], []>} : vector<8x40xbf16>, vector<40x128xbf16>, vector<8x128xf32> -> vector<8x128xf32>
      %23 = vector.broadcast %20 : vector<1x128xf32> to vector<8x128xf32>
      %24 = arith.addf %22, %23 : vector<8x128xf32>
      %c0_19 = arith.constant 0 : index
      %c0_20 = arith.constant 0 : index
      %c0_21 = arith.constant 0 : index
      %25 = vector.load %arg7[%c0_19, %c0_20, %c0_21] : memref<2x8x128xf32, #tpu.memory_space<vmem>>, vector<1x8x128xf32>
      %26 = vector.shape_cast %25 : vector<1x8x128xf32> to vector<8x128xf32>
      %27 = vector.shape_cast %24 : vector<8x128xf32> to vector<1x8x128xf32>
      tpu.vector_store %arg7[%c0_19, %c0_20, %c0_21], %27 {strides = array<i32>} : memref<2x8x128xf32, #tpu.memory_space<vmem>>, vector<1x8x128xf32>,
      %28 = arith.truncf %18 : vector<8x40xf32> to vector<8x40xbf16>
      %cst_22 = arith.constant dense<0.000000e+00> : vector<8x128xf32>
      %29 = tpu.matmul %28, %19, %cst_22 {dimension_numbers = #tpu.dot_dimension_numbers<[1], [0], [0], [1], [0, 0, 1, 1], [], []>} : vector<8x40xbf16>, vector<40x128xbf16>, vector<8x128xf32> -> vector<8x128xf32>
      %30 = vector.broadcast %20 : vector<1x128xf32> to vector<8x128xf32>
      %31 = arith.addf %29, %30 : vector<8x128xf32>
      %c1 = arith.constant 1 : index
      %c0_23 = arith.constant 0 : index
      %c0_24 = arith.constant 0 : index
      %32 = vector.load %arg7[%c1, %c0_23, %c0_24] : memref<2x8x128xf32, #tpu.memory_space<vmem>>, vector<1x8x128xf32>
      %33 = vector.shape_cast %32 : vector<1x8x128xf32> to vector<8x128xf32>
      %34 = vector.shape_cast %31 : vector<8x128xf32> to vector<1x8x128xf32>
      tpu.vector_store %arg7[%c1, %c0_23, %c0_24], %34 {strides = array<i32>} : memref<2x8x128xf32, #tpu.memory_space<vmem>>, vector<1x8x128xf32>,
    } else {
    }
    return
  }
  func.func @transform_0(%arg0: i32, %arg1: i32) -> (i32, i32) {
    %c0_i32 = arith.constant 0 : i32
    return %arg0, %arg1 : i32, i32
  }
  func.func @transform_1(%arg0: i32, %arg1: i32) -> (i32, i32) {
    %c0_i32 = arith.constant 0 : i32
    %c0_i32_0 = arith.constant 0 : i32
    return %arg1, %c0_i32 : i32, i32
  }
  func.func @transform_2(%arg0: i32, %arg1: i32) -> (i32, i32) {
    %c0_i32 = arith.constant 0 : i32
    %c0_i32_0 = arith.constant 0 : i32
    %c0_i32_1 = arith.constant 0 : i32
    return %c0_i32, %c0_i32_0 : i32, i32
  }
  func.func @transform_3(%arg0: i32, %arg1: i32) -> (i32, i32) {
    %c0_i32 = arith.constant 0 : i32
    %c0_i32_0 = arith.constant 0 : i32
    %c0_i32_1 = arith.constant 0 : i32
    return %c0_i32, %c0_i32_0 : i32, i32
  }
  func.func @transform_4(%arg0: i32, %arg1: i32) -> (i32, i32) {
    %c0_i32 = arith.constant 0 : i32
    %c0_i32_0 = arith.constant 0 : i32
    %c0_i32_1 = arith.constant 0 : i32
    return %c0_i32, %c0_i32_0 : i32, i32
  }
  func.func @transform_5(%arg0: i32, %arg1: i32) -> (i32, i32, i32) {
    %c0_i32 = arith.constant 0 : i32
    %c0_i32_0 = arith.constant 0 : i32
    %c0_i32_1 = arith.constant 0 : i32
    return %c0_i32, %arg0, %c0_i32_0 : i32, i32, i32
  }
}

</mosaic_0001>

<bundles_post_ra>
// kernel: tpu_custom_call.1
= control target key start
LH: loop header
LB: loop body
LE: loop exit
PB: predicated region body
PF: predicated region fallthrough
CT: control target
= control target key end

     0   :  { %10 = vsyncpa [#allocation4], 0  ;;  %s1122_s18 = smov 0   ;;  %s1124_s19 = smov 0   ;;  %s1248_s0 = inlined_call_operand.vmem [shape: f32[8,1024], index: 0, kind: input, shape index: {}]   ;;  %s1249_s1 = inlined_call_operand.vmem [shape: bf16[1024,40], index: 1, kind: input, shape index: {}]   ;;  %s1250_s2 = inlined_call_operand.vmem [shape: f32[1,40], index: 2, kind: input, shape index: {}]   ;;  %s1251_s3 = inlined_call_operand.vmem [shape: bf16[40,128], index: 3, kind: input, shape index: {}]   ;;  %s1252_s4 = inlined_call_operand.vmem [shape: f32[1,128], index: 4, kind: input, shape index: {}]   ;;  %s1253_s5 = inlined_call_operand.hbm [shape: f32[2,8,128], index: 5, kind: output, shape index: {}]  }
   0x1   :  { %s1126_s20 = smov 0  }
   0x2 LB: > { %s836_s21 = sadd.s32 4294967295, %s1084_s20   ;;  %s25_s22 = sadd.s32 1, %s1080_s19  ;;  %s1084_s20 = sphi %s1126_s20, %s16_s20   ;;  %s1080_s19 = sphi %s1124_s19, %s1256_s19   ;;  %s1076_s18 = sphi %s1122_s18, %s1255_s18  }
   0x3   : > { %p26_p0 = scmp.ge.s32.totalorder %s25_s22, 2  ;;  %p839_p1 = scmp.ge.s32.totalorder %s1084_s20, 1 }
   0x4   : > { %p218_p2 = scmp.lt.s32.totalorder %s1084_s20, 3 }
   0x5   : > { %s1258_s22 = smov (%p26_p0, %s25_s22), 0 }
   0x6   : > { %p219_p3 = pnand %p839_p1, %p218_p2 }
   0x7   : > { %s840_s23 = sshll.u32 (!%p219_p3), %s1076_s18, 2  ;;  %s842_s24 = sshll.u32 (!%p219_p3), %s1076_s18, 6 }
   0x8   : > { %222 = sbr.rel (%p219_p3) target bundleno = 534 (0x216), region = 40  ;;  %p253_p4 = scmp.lt.s32.totalorder (!%p219_p3), %s840_s23, 7 }
   0x9   : > { %p261_p5 = scmp.lt.s32.totalorder (!%p219_p3), %s842_s24, 127  ;;  %p844_p6 = scmp.ne.s32.totalorder (!%p219_p3), %s1076_s18, 0 }
   0xf   : > { %s1260_s23 = smov (!%p253_p4, %s840_s23), 7  ;;  %s1262_s24 = smov (!%p261_p5, %s842_s24), 127 }
  0x10   : > { %s841_s25 = sshll.u32 %s1260_s23, 3  ;;  %s843_s29 = sshll.u32 %s1262_s24, 2  ;;  %vm271_vm0 = vcmask (!%p844_p6), 326656   ;;  %v1086_v0 = vmov (!%p844_p6), 0.0  }
  0x11   : > { %s1148_s28 = scalar_lea.vmem %s1248_s0, %s841_s25  ;;  %s1153_s7 = scalar_lea.vmem %s1249_s1, %s843_s29  ;;  %272 = vst.msk [vmem:[#allocation2] sm:$0xff] (!%p844_p6), %vm271_vm0, %v1086_v0 }
  0x12   : > { %270 = sbr.rel (%p844_p6) target bundleno = 25 (0x19), region = 44 }
  0x19 PF: > { %v997_v1 = vld [vmem:[%s1153_s7 + $0x40] sm:$0xff]   ;;  %v1001_v5 = vld [vmem:[%s1153_s7 + $0x48] sm:$0xff]   ;;  %v1005_v9 = vld [vmem:[%s1153_s7 + $0x50] sm:$0xff]   ;;  %vm619_vm1 = vcmask 326656   ;;  %p877_p7 = scmp.ne.s32.totalorder %s1076_s18, 1 }
  0x1a   : > { %v998_v2 = vld [vmem:[%s1153_s7 + $0xc0] sm:$0xff]   ;;  %889 = vmatprep.subr.bf16.mxu0 %v997_v1  ;;  %v1002_v6 = vld [vmem:[%s1153_s7 + $0xc8] sm:$0xff]   ;;  %v1006_v10 = vld [vmem:[%s1153_s7 + $0xd0] sm:$0xff]   ;;  %v1087_v55 = vmov (!%p877_p7), 0.0   ;;  %vm666_vm2 = vcmask (!%p877_p7), 1043456   ;;  %vm1088_vm3 = vmmov (!%p877_p7), 0  }
  0x1b   : > { %v999_v3 = vld [vmem:[%s1153_s7] sm:$0xff]   ;;  %911 = vmatprep.subr.bf16.mxu1 %v998_v2  ;;  %v1003_v7 = vld [vmem:[%s1153_s7 + $0x8] sm:$0xff]   ;;  %v1007_v11 = vld [vmem:[%s1153_s7 + $0x10] sm:$0xff]  }
  0x1c   : > { %v1000_v4 = vld [vmem:[%s1153_s7 + $0x80] sm:$0xff]   ;;  %890 = vmatpush3.bf16.msra.mxu0 %v999_v3  ;;  %v1004_v8 = vld [vmem:[%s1153_s7 + $0x88] sm:$0xff]   ;;  %v1008_v12 = vld [vmem:[%s1153_s7 + $0x90] sm:$0xff]  }
  0x1d   : > { %912 = vmatpush3.bf16.msra.mxu1 %v1000_v4  ;;  %891 = vmatprep.subr.bf16.mxu0 %v1001_v5  ;;  %v1009_v13 = vld [vmem:[%s1153_s7 + $0x58] sm:$0xff]   ;;  %v1013_v17 = vld [vmem:[%s1153_s7 + $0x60] sm:$0xff]   ;;  %v1017_v21 = vld [vmem:[%s1153_s7 + $0x68] sm:$0xff]  }
  0x1e   : > { %913 = vmatprep.subr.bf16.mxu1 %v1002_v6  ;;  %v1010_v14 = vld [vmem:[%s1153_s7 + $0xd8] sm:$0xff]   ;;  %v1014_v18 = vld [vmem:[%s1153_s7 + $0xe0] sm:$0xff]   ;;  %v1018_v22 = vld [vmem:[%s1153_s7 + $0xe8] sm:$0xff]  }
  0x1f   : > { %v1011_v15 = vld [vmem:[%s1153_s7 + $0x18] sm:$0xff]   ;;  %v1015_v19 = vld [vmem:[%s1153_s7 + $0x20] sm:$0xff]   ;;  %v1019_v23 = vld [vmem:[%s1153_s7 + $0x28] sm:$0xff]  }
  0x20   : > { %892 = vmatpush3.bf16.msra.mxu0 %v1003_v7  ;;  %v1012_v16 = vld [vmem:[%s1153_s7 + $0x98] sm:$0xff]   ;;  %v1016_v20 = vld [vmem:[%s1153_s7 + $0xa0] sm:$0xff]   ;;  %v1020_v24 = vld [vmem:[%s1153_s7 + $0xa8] sm:$0xff]  }
  0x21   : > { %914 = vmatpush3.bf16.msra.mxu1 %v1004_v8  ;;  %893 = vmatprep.subr.bf16.mxu0 %v1005_v9  ;;  %v1021_v25 = vld [vmem:[%s1153_s7 + $0x70] sm:$0xff]   ;;  %v1025_v29 = vld [vmem:[%s1153_s7 + $0x78] sm:$0xff]   ;;  %v275_v33 = vld [vmem:[%s1148_s28 + $0x8] sm:$0xff] }
  0x22   : > { %915 = vmatprep.subr.bf16.mxu1 %v1006_v10  ;;  %v1022_v26 = vld [vmem:[%s1153_s7 + $0xf0] sm:$0xff]   ;;  %v1026_v30 = vld [vmem:[%s1153_s7 + $0xf8] sm:$0xff]   ;;  %v274_v35 = vld [vmem:[%s1148_s28] sm:$0xff]  ;;  %v279_v36 = vpack.c.bf16 %v275_v33, %v275_v33 }
  0x23   : > { %v1023_v27 = vld [vmem:[%s1153_s7 + $0x30] sm:$0xff]   ;;  %v1027_v31 = vld [vmem:[%s1153_s7 + $0x38] sm:$0xff]   ;;  %v278_v38 = vpack.c.bf16 %v274_v35, %v274_v35  ;;  %v273_v49 = vld [vmem:[#allocation2] sm:$0xff] }
  0x24   : > { %894 = vmatpush3.bf16.msra.mxu0 %v1007_v11  ;;  %v1024_v28 = vld [vmem:[%s1153_s7 + $0xb0] sm:$0xff]   ;;  %v1028_v32 = vld [vmem:[%s1153_s7 + $0xb8] sm:$0xff]   ;;  %570 = vmatprep.mubr.bf16.mxu0 %v279_v36  ;;  %v1029_v54 = vld [vmem:[%s1251_s3] sm:$0xff] (!%p877_p7)  }
  0x25   : > { %916 = vmatpush3.bf16.msra.mxu1 %v1008_v12  ;;  %895 = vmatprep.subr.bf16.mxu0 %v1009_v13  ;;  %v277_v34 = vld [vmem:[%s1148_s28 + $0x18] sm:$0xff]  ;;  %v276_v39 = vld [vmem:[%s1148_s28 + $0x10] sm:$0xff]  ;;  %v1030_v56 = vld [vmem:[%s1251_s3 + $0x8] sm:$0xff] (!%p877_p7)  }
  0x26   : > { %917 = vmatprep.subr.bf16.mxu1 %v1010_v14  ;;  %v281_v37 = vpack.c.bf16 %v277_v34, %v277_v34  ;;  %v280_v40 = vpack.c.bf16 %v276_v39, %v276_v39  ;;  %v1031_v58 = vld [vmem:[%s1251_s3 + $0x10] ss:$0 sps:$4 sm:$0xff] (!%p877_p7)   ;;  %v878_v59 = vld [vmem:[%s1250_s2] ss:$0 sm:$0xff] (!%p877_p7) }
  0x27   : > { %v668_v62 = vsel (!%p877_p7), %vm666_vm2, %v1031_v58, 0  ;;  %v879_v1 = vld [vmem:[%s1252_s4] ss:$0 sm:$0xff] (!%p877_p7) }
  0x28   : > { %896 = vmatpush3.bf16.msra.mxu0 %v1011_v15  ;;  %610 = vmatprep.mubr.bf16.mxu1 %v281_v37 }
  0x29   : > { %918 = vmatpush3.bf16.msra.mxu1 %v1012_v16  ;;  %897 = vmatprep.subr.bf16.mxu0 %v1013_v17 }
  0x2a   : > { %919 = vmatprep.subr.bf16.mxu1 %v1014_v18 }
  0x2c   : > { %898 = vmatpush3.bf16.msra.mxu0 %v1015_v19 }
  0x2d   : > { %920 = vmatpush3.bf16.msra.mxu1 %v1016_v20  ;;  %899 = vmatprep.subr.bf16.mxu0 %v1017_v21 }
  0x2e   : > { %921 = vmatprep.subr.bf16.mxu1 %v1018_v22 }
  0x30   : > { %900 = vmatpush3.bf16.msra.mxu0 %v1019_v23 }
  0x31   : > { %922 = vmatpush3.bf16.msra.mxu1 %v1020_v24  ;;  %901 = vmatprep.subr.bf16.mxu0 %v1021_v25 }
  0x32   : > { %923 = vmatprep.subr.bf16.mxu1 %v1022_v26 }
  0x34   : > { %902 = vmatpush3.bf16.msra.mxu0 %v1023_v27 }
  0x35   : > { %924 = vmatpush3.bf16.msra.mxu1 %v1024_v28  ;;  %903 = vmatprep.subr.bf16.mxu0 %v1025_v29 }
  0x36   : > { %925 = vmatprep.subr.bf16.mxu1 %v1026_v30 }
  0x38   : > { %904 = vmatpush3.bf16.msra.mxu0 %v1027_v31 }
  0x39   : > { %926 = vmatpush3.bf16.msra.mxu1 %v1028_v32  ;;  %941 = vmatprep.subr.bf16.mxu0 (!%p877_p7), %v1087_v55 }
  0x3a   : > { %951 = vmatprep.subr.bf16.mxu1 (!%p877_p7), %v1087_v55 }
  0x3b   : > { %571 = vmatmul.mubr.bf16.vlgmr.msra.gmra.mrb[0].mxu0 %v278_v38 }
  0x3c   : > { %611 = vmatmul.mubr.bf16.vlgmr.msra.gmra.mrb[0].mxu1 %v280_v40  ;;  %942 = vmatpush3.bf16.msra.mxu0 (!%p877_p7), %v1029_v54 }
  0x3d   : > { %952 = vmatpush3.bf16.msra.mxu1 (!%p877_p7), %v1029_v54  ;;  %943 = vmatprep.subr.bf16.mxu0 (!%p877_p7), %v1087_v55 }
  0x3e   : > { %953 = vmatprep.subr.bf16.mxu1 (!%p877_p7), %v1087_v55  ;;  %947 = vmatprep.mubr.msk.bf16.mxu0 (!%p877_p7), %vm1088_vm3, %v1087_v55 }
  0x3f   : > { %957 = vmatprep.mubr.msk.bf16.mxu1 (!%p877_p7), %vm1088_vm3, %v1087_v55 }
  0x40   : > { %944 = vmatpush3.bf16.msra.mxu0 (!%p877_p7), %v1030_v56 }
  0x41   : > { %954 = vmatpush3.bf16.msra.mxu1 (!%p877_p7), %v1030_v56  ;;  %945 = vmatprep.subr.bf16.mxu0 (!%p877_p7), %v1087_v55 }
  0x42   : > { %955 = vmatprep.subr.bf16.mxu1 (!%p877_p7), %v1087_v55 }
  0x44   : > { %946 = vmatpush3.bf16.msra.mxu0 (!%p877_p7), %v668_v62 }
  0x45   : > { %956 = vmatpush3.bf16.msra.mxu1 (!%p877_p7), %v668_v62 }
 0x10e   : > { %v905_v41 = vpop.f32.mrb[0].mxu0 }
 0x10f   : > { %v927_v42 = vpop.f32.mrb[0].mxu1  ;;  %v906_v43 = vpop.f32.mrb[1].mxu0 }
 0x110   : > { %v928_v44 = vpop.f32.mrb[1].mxu1  ;;  %v907_v45 = vadd.f32 %v906_v43, %v905_v41  ;;  %v908_v47 = vpop.f32.mrb[2].mxu0 }
 0x111   : > { %v929_v46 = vadd.f32 %v928_v44, %v927_v42  ;;  %v930_v48 = vpop.f32.mrb[2].mxu1  ;;  %v909_v50 = vpop.f32.mrb[3].mxu0  ;;  %624 = sbr.rel (%p877_p7) target bundleno = 508 (0x1fc), region = 48 }
 0x112   : > { %v931_v51 = vpop.f32.mrb[3].mxu1 }
 0x113   : > { %v613_v52 = vadd.f32 %v929_v46, %v907_v45 }
 0x115   : > { %v618_v53 = vadd.f32 %v613_v52, %v273_v49 }
 0x117   : > { %620 = vst.msk [vmem:[#allocation2] sm:$0xff] %vm619_vm1, %v618_v53 }
 0x11e   : > { %v625_v57 = vld [vmem:[#allocation2] sm:$0xff] }
 0x11f   : > { %v633_v60 = vadd.f32 %v878_v59, %v625_v57 }
 0x121   : > { %v634_v61 = vmax.f32 %v633_v60, 0.0  ;;  %v641_v63 = vpack.c.bf16 %v633_v60, %v633_v60 }
 0x123   : > { %v711_v0 = vpack.c.bf16 %v634_v61, %v634_v61  ;;  %948 = vmatmul.mubr.msk.bf16.vlgmr.msra.gmra.mrb[0].mxu0 %vm619_vm1, %v641_v63 }
 0x125   : > { %958 = vmatmul.mubr.msk.bf16.vlgmr.msra.gmra.mrb[0].mxu1 %vm619_vm1, %v711_v0 }
 0x1f6   : > { %v704_v2 = vpop.f32.mrb[0].mxu0 }
 0x1f7   : > { %v705_v4 = vadd.f32 %v879_v1, %v704_v2  ;;  %v949_v6 = vpop.f32.mrb[1].mxu0 }
 0x1f8   : > { %v749_v3 = vpop.f32.mrb[0].mxu1  ;;  %v707_v8 = vpop.f32.mrb[2].mxu0 }
 0x1f9   : > { %v750_v5 = vadd.f32 %v879_v1, %v749_v3  ;;  %v959_v7 = vpop.f32.mrb[1].mxu1  ;;  %710 = vst [vmem:[#allocation3] sm:$0xff] %v705_v4  ;;  %v950_v10 = vpop.f32.mrb[3].mxu0 }
 0x1fa   : > { %v752_v9 = vpop.f32.mrb[2].mxu1 }
 0x1fb   : > { %756 = vst [vmem:[#allocation3 + $0x8] sm:$0xff] %v750_v5  ;;  %v960_v11 = vpop.f32.mrb[3].mxu1 }
 0x1fc PF: > { %p1213_p8 = scmp.eq.s32.totalorder %s836_s21, 1  ;;  %s1089_s23 = smov [#allocation3]  }
 0x1fd   : > { %s765_s24 = sshll.u32 %s1089_s23, 4  ;;  %s766_s24 = int_to_ptr.vmem [resolvable:$true] %s765_s24 }
 0x1fe   : > { %s1032_s25 = scalar_lea.vmem %s766_s24, 256  ;;  %p1039_p12 = scmp.lt.s32.totalorder %s766_s24, %s766_s24 }
 0x1ff   : > { %p1033_p9 = scmp.ne.s32.totalorder %s766_s24, %s1032_s25  ;;  %p1040_p13 = scmp.lt.s32.totalorder %s1032_s25, %s1032_s25 }
 0x201   : > { %p1034_p10 = pnand %p1033_p9, %p1213_p8  ;;  %p1041_p0 = por %p1040_p13, %p1039_p12 }
 0x203   : > { %p1035_p11 = pneg %p1034_p10 }
 0x205   : > { %p1042_p1 = pnand %p1041_p0, %p1035_p11 }
 0x207   : > { %1045 = shalt.err (!%p1042_p1)
}
 0x208   : > { %s1046_s21 = scalar_lea.hbm %s1253_s5, 256 }
 0x209   : > { %p1047_p2 = scmp.ne.s32.totalorder %s1253_s5, %s1046_s21  ;;  %p1052_p5 = scmp.lt.u32.totalorder %s1046_s21, %s1253_s5 }
 0x20b   : > { %p1048_p3 = pnand %p1047_p2, %p1213_p8 }
 0x20d   : > { %p1049_p4 = pneg %p1048_p3 }
 0x20f   : > { %p1054_p6 = pnand %p1052_p5, %p1049_p4 }
 0x211   : > { %1057 = shalt.err (!%p1054_p6)
}
 0x212   : > { %s1090_s7 = smov 128   ;;  %s1091_s8 = smov 8  }
 0x213   : > { %962 = dma.vmem_to_hbm [thread:$0]  (%p1213_p8), %s766_s24, 256, %s1253_s5, [#allocation4], %s1090_s7, %s1090_s7, %s1091_s8  }
 0x214   : > { %1071 = dma.done.wait (%p1213_p8), [#allocation4], 256  }
 0x215   : > { %1073 = vsyncadd (%p1213_p8), [#allocation4], 4294967040 }
 0x216 PF: > { %s16_s20 = sadd.s32 1, %s1084_s20   ;;  %s1255_s18 = smov %s1080_s19 }
 0x217   : > { %p13_p7 = scmp.ge.s32.totalorder %s16_s20, 4   ;;  %s1256_s19 = smov %s1258_s22 }
 0x219   :  { %15 = sbr.rel (!%p13_p7) target bundleno = 2 (0x2), region = 80 }
 0x220   :  { %781 = vsyncpa [#allocation4], 1 }
 0x221   :  { %783 = vsyncpa [#allocation4 + $0x1], 1 }

</bundles_post_ra>
